<compile_context>
chip_gen: v6e
topology: v6e:2x2x1
jax: 0.10.0
libtpu: 0.0.40
codegen_flags: <defaults>
</compile_context>

<pallas_src>
import functools

import jax
import jax.numpy as jnp
import numpy as np
from jax import lax
from jax.experimental import pallas as pl
from jax.experimental.pallas import tpu as pltpu


def skipgram_kernel(idx_ref, emb_hbm, w_ref, b_ref, out_ref, ebuf, sem, *, tm):
    """One grid step processes one block of `tm` tokens.

    idx_ref : SMEM (n_padded,) int32   scalar-prefetched token indices
    emb_hbm : HBM  (D_in, H)  f32      embedding table (gathered manually)
    w_ref   : VMEM (H, D_in)  f32      fc2 weight, pre-transposed, resident
    b_ref   : VMEM (1, D_in)  f32      fc2 bias
    out_ref : VMEM (tm, D_in) f32      output block
    ebuf    : VMEM (2*tm, H)  f32      double-buffered gathered embedding rows
    sem     : DMA semaphores (2,)      one per buffer slot
    """
    i = pl.program_id(0)
    nblk = pl.num_programs(0)
    slot = i % 2

    def start_gather(blk, dst_slot):
        base = blk * tm
        dst_base = dst_slot * tm

        def body(r, carry):
            row = idx_ref[base + r]
            pltpu.make_async_copy(
                emb_hbm.at[pl.ds(row, 1), :],
                ebuf.at[pl.ds(dst_base + r, 1), :],
                sem.at[dst_slot],
            ).start()
            return carry

        lax.fori_loop(0, tm, body, 0)

    def wait_gather(dst_slot):
        # Each started row-copy signals sem[dst_slot] with one (1, H) row's
        # worth of credits; consume all `tm` of them.
        def body(r, carry):
            pltpu.make_async_copy(
                emb_hbm.at[pl.ds(0, 1), :],
                ebuf.at[pl.ds(0, 1), :],
                sem.at[dst_slot],
            ).wait()
            return carry

        lax.fori_loop(0, tm, body, 0)

    # Prime the pipeline on the first grid step.
    @pl.when(i == 0)
    def _():
        start_gather(0, 0)

    # Prefetch the next token block into the other slot while this block
    # computes (its data was already consumed at the previous grid step).
    @pl.when(i + 1 < nblk)
    def _():
        start_gather(i + 1, (i + 1) % 2)

    wait_gather(slot)

    start = pl.multiple_of(slot * tm, tm)
    z = ebuf[pl.ds(start, tm), :]                                   # (tm, H)
    acc = jnp.dot(z, w_ref[...], preferred_element_type=jnp.float32)
    out_ref[...] = (acc + b_ref[...]).astype(out_ref.dtype)


def mlp_forward(x, emb_table, fc2_weight_t, fc2_bias, *, tm=128):
    """x: integer indices of any shape; returns x.shape + (D_in,) float32.

    emb_table:    (D_in, H) f32   embedding.weight
    fc2_weight_t: (H, D_in) f32   fc2.weight transposed ONCE outside this call
    fc2_bias:     (D_in,)   f32
    """
    D_in, H = emb_table.shape
    orig_shape = x.shape
    idx = x.reshape(-1).astype(jnp.int32)
    n_tokens = idx.shape[0]

    n_blocks = pl.cdiv(n_tokens, tm)
    n_padded = n_blocks * tm
    if n_padded != n_tokens:
        idx = jnp.pad(idx, (0, n_padded - n_tokens))   # pad with row 0 (valid)

    b = fc2_bias.reshape(1, D_in)

    grid_spec = pltpu.PrefetchScalarGridSpec(
        num_scalar_prefetch=1,
        grid=(n_blocks,),
        in_specs=[
            # Embedding table stays in HBM; rows are gathered manually.
            pl.BlockSpec(memory_space=pl.ANY),
            # Full fc2 weight tile, resident every step.
            pl.BlockSpec((H, D_in), lambda i, idx_ref: (0, 0)),
            # Bias.
            pl.BlockSpec((1, D_in), lambda i, idx_ref: (0, 0)),
        ],
        out_specs=pl.BlockSpec((tm, D_in), lambda i, idx_ref: (i, 0)),
        scratch_shapes=[
            pltpu.VMEM((2 * tm, H), jnp.float32),     # double-buffered gather
            pltpu.SemaphoreType.DMA((2,)),
        ],
    )

    cost = pl.CostEstimate(
        flops=2 * n_padded * H * D_in,
        transcendentals=0,
        bytes_accessed=(n_padded * 4            # indices
                        + n_padded * H * 4      # gathered embedding rows
                        + H * D_in * 4          # weight
                        + D_in * 4              # bias
                        + n_padded * D_in * 4),  # output
    )

    out_flat = pl.pallas_call(
        functools.partial(skipgram_kernel, tm=tm),
        out_shape=jax.ShapeDtypeStruct((n_padded, D_in), jnp.float32),
        grid_spec=grid_spec,
        compiler_params=pltpu.CompilerParams(
            dimension_semantics=("arbitrary",)),
        cost_estimate=cost,
    )(idx, emb_table, fc2_weight_t, b)

    return out_flat[:n_tokens].reshape(orig_shape + (D_in,))


def init_params(key, D_in, H):
    k_emb, k_w, k_b = jax.random.split(key, 3)
    # embedding.weight ~ U(-sqrt(3), sqrt(3))  (matches init_weights)
    emb = jax.random.uniform(
        k_emb, (D_in, H), jnp.float32, -np.sqrt(3.0), np.sqrt(3.0))
    # nn.Linear(H, D_in) default init: U(-1/sqrt(H), 1/sqrt(H))
    bound = 1.0 / np.sqrt(H)
    w = jax.random.uniform(k_w, (D_in, H), jnp.float32, -bound, bound)
    b = jax.random.uniform(k_b, (D_in,), jnp.float32, -bound, bound)
    return emb, w, b


if __name__ == "__main__":
    D_in = 512   # vocab size
    H = 128      # embedding / hidden dim
    batch, seq = 2, 8

    key = jax.random.PRNGKey(0)
    k_params, k_x = jax.random.split(key)
    emb_table, fc2_weight, fc2_bias = init_params(k_params, D_in, H)
    fc2_weight_t = jnp.asarray(fc2_weight.T)   # transpose once, outside forward

    x = jax.random.randint(k_x, (batch, seq), 0, D_in, dtype=jnp.int32)

    out = mlp_forward(x, emb_table, fc2_weight_t, fc2_bias, tm=128)
    out = jax.block_until_ready(out)

    # pure-JAX reference for correctness
    ref = jnp.take(emb_table, x, axis=0) @ fc2_weight.T + fc2_bias
    assert out.shape == (batch, seq, D_in)
    np.testing.assert_allclose(np.asarray(out), np.asarray(ref),
                               rtol=1e-5, atol=1e-4)

    print("KERNEL_OK")
</pallas_src>

<mosaic_0001>
module attributes {stable_mosaic.version = 11 : i64} {
  func.func @skipgram_kernel(%arg0: i32, %arg1: memref<128xi32, #tpu.memory_space<smem>>, %arg2: memref<512x128xf32, #tpu.memory_space<any>>, %arg3: memref<128x512xf32, #tpu.memory_space<vmem>>, %arg4: memref<1x512xf32, #tpu.memory_space<vmem>>, %arg5: memref<128x512xf32, #tpu.memory_space<vmem>>, %arg6: memref<256x128xf32, #tpu.memory_space<vmem>>, %arg7: memref<2x!tpu.dma_semaphore, #tpu.memory_space<semaphore_mem>>) attributes {dimension_semantics = [#tpu.dimension_semantics<arbitrary>], iteration_bounds = array<i64: 1>, scalar_prefetch = 1 : i64, scratch_operands = 2 : i64, tpu.core_type = #tpu.core_type<tc>, window_params = [{}, {pipeline_mode = #tpu.pipeline_mode<synchronous>, transform_indices = @transform_1, window_bounds = array<i64: 128, 512>}, {pipeline_mode = #tpu.pipeline_mode<synchronous>, transform_indices = @transform_2, window_bounds = array<i64: 1, 512>}, {transform_indices = @transform_3, window_bounds = array<i64: 128, 512>}]} {
    %c2_i32 = arith.constant 2 : i32
    %c0_i32 = arith.constant 0 : i32
    %0 = arith.cmpi eq, %c2_i32, %c0_i32 : i32
    %c1_i32 = arith.constant 1 : i32
    %1 = arith.select %0, %c1_i32, %c2_i32 : i32
    %2 = arith.remsi %arg0, %1 : i32
    %c0_i32_0 = arith.constant 0 : i32
    %3 = arith.cmpi ne, %2, %c0_i32_0 : i32
    %c0_i32_1 = arith.constant 0 : i32
    %4 = arith.cmpi slt, %2, %c0_i32_1 : i32
    %c0_i32_2 = arith.constant 0 : i32
    %5 = arith.cmpi slt, %1, %c0_i32_2 : i32
    %6 = arith.xori %4, %5 : i1
    %7 = arith.andi %6, %3 : i1
    %8 = arith.addi %2, %1 : i32
    %9 = arith.select %7, %8, %2 : i32
    %c0_i32_3 = arith.constant 0 : i32
    %10 = arith.cmpi eq, %arg0, %c0_i32_3 : i32
    %11 = arith.extui %10 : i1 to i32
    %c0_i32_4 = arith.constant 0 : i32
    %12 = arith.cmpi ne, %11, %c0_i32_4 : i32
    scf.if %12 {
      %c0_i32_17 = arith.constant 0 : i32
      %c128_i32_18 = arith.constant 128 : i32
      %28 = arith.addi %c0_i32_17, %c128_i32_18 : i32
      %c1_i32_19 = arith.constant 1 : i32
      scf.for %arg8 = %c0_i32_17 to %28 step %c1_i32_19  : i32 {
        %c0_i32_21 = arith.constant 0 : i32
        %29 = arith.addi %c0_i32_21, %arg8 : i32
        %30 = arith.index_cast %29 : i32 to index
        %31 = memref.load %arg1[%30] : memref<128xi32, #tpu.memory_space<smem>>
        %c0_i32_22 = arith.constant 0 : i32
        %32 = arith.addi %c0_i32_22, %arg8 : i32
        %c0_i32_23 = arith.constant 0 : i32
        %c0_i32_24 = arith.constant 0 : i32
        %33 = tpu.memref_slice %arg2[%31, %c0_i32_24] : memref<512x128xf32, #tpu.memory_space<any>> -> memref<1x128xf32, #tpu.memory_space<any>>
        %c0_i32_25 = arith.constant 0 : i32
        %34 = tpu.memref_slice %arg6[%32, %c0_i32_25] : memref<256x128xf32, #tpu.memory_space<vmem>> -> memref<1x128xf32, #tpu.memory_space<vmem>>
        %35 = tpu.memref_slice %arg7[%c0_i32_23] : memref<2x!tpu.dma_semaphore, #tpu.memory_space<semaphore_mem>> -> memref<1x!tpu.dma_semaphore, #tpu.memory_space<semaphore_mem>>
        %36 = tpu.memref_squeeze %35 : memref<1x!tpu.dma_semaphore, #tpu.memory_space<semaphore_mem>> -> memref<!tpu.dma_semaphore, #tpu.memory_space<semaphore_mem>>
        tpu.enqueue_dma source(%33 : memref<1x128xf32, #tpu.memory_space<any>>) target(%34 : memref<1x128xf32, #tpu.memory_space<vmem>>) target_semaphore(%36 : memref<!tpu.dma_semaphore, #tpu.memory_space<semaphore_mem>>)
      }
      %c128_i32_20 = arith.constant 128 : i32
    } else {
    }
    %c1_i32_5 = arith.constant 1 : i32
    %13 = arith.addi %arg0, %c1_i32_5 : i32
    %c1_i32_6 = arith.constant 1 : i32
    %14 = arith.cmpi slt, %13, %c1_i32_6 : i32
    %15 = arith.extui %14 : i1 to i32
    %c0_i32_7 = arith.constant 0 : i32
    %16 = arith.cmpi ne, %15, %c0_i32_7 : i32
    scf.if %16 {
      %c1_i32_17 = arith.constant 1 : i32
      %28 = arith.addi %arg0, %c1_i32_17 : i32
      %c1_i32_18 = arith.constant 1 : i32
      %29 = arith.addi %arg0, %c1_i32_18 : i32
      %c2_i32_19 = arith.constant 2 : i32
      %c0_i32_20 = arith.constant 0 : i32
      %30 = arith.cmpi eq, %c2_i32_19, %c0_i32_20 : i32
      %c1_i32_21 = arith.constant 1 : i32
      %31 = arith.select %30, %c1_i32_21, %c2_i32_19 : i32
      %32 = arith.remsi %29, %31 : i32
      %c0_i32_22 = arith.constant 0 : i32
      %33 = arith.cmpi ne, %32, %c0_i32_22 : i32
      %c0_i32_23 = arith.constant 0 : i32
      %34 = arith.cmpi slt, %32, %c0_i32_23 : i32
      %c0_i32_24 = arith.constant 0 : i32
      %35 = arith.cmpi slt, %31, %c0_i32_24 : i32
      %36 = arith.xori %34, %35 : i1
      %37 = arith.andi %36, %33 : i1
      %38 = arith.addi %32, %31 : i32
      %39 = arith.select %37, %38, %32 : i32
      %c128_i32_25 = arith.constant 128 : i32
      %40 = arith.muli %28, %c128_i32_25 : i32
      %c128_i32_26 = arith.constant 128 : i32
      %41 = arith.muli %39, %c128_i32_26 : i32
      %c0_i32_27 = arith.constant 0 : i32
      %c128_i32_28 = arith.constant 128 : i32
      %42 = arith.addi %c0_i32_27, %c128_i32_28 : i32
      %c1_i32_29 = arith.constant 1 : i32
      scf.for %arg8 = %c0_i32_27 to %42 step %c1_i32_29  : i32 {
        %43 = arith.addi %40, %arg8 : i32
        %44 = arith.index_cast %43 : i32 to index
        %45 = memref.load %arg1[%44] : memref<128xi32, #tpu.memory_space<smem>>
        %46 = arith.addi %41, %arg8 : i32
        %c0_i32_31 = arith.constant 0 : i32
        %47 = tpu.memref_slice %arg2[%45, %c0_i32_31] : memref<512x128xf32, #tpu.memory_space<any>> -> memref<1x128xf32, #tpu.memory_space<any>>
        %c0_i32_32 = arith.constant 0 : i32
        %48 = tpu.memref_slice %arg6[%46, %c0_i32_32] : memref<256x128xf32, #tpu.memory_space<vmem>> -> memref<1x128xf32, #tpu.memory_space<vmem>>
        %49 = tpu.memref_slice %arg7[%39] : memref<2x!tpu.dma_semaphore, #tpu.memory_space<semaphore_mem>> -> memref<1x!tpu.dma_semaphore, #tpu.memory_space<semaphore_mem>>
        %50 = tpu.memref_squeeze %49 : memref<1x!tpu.dma_semaphore, #tpu.memory_space<semaphore_mem>> -> memref<!tpu.dma_semaphore, #tpu.memory_space<semaphore_mem>>
        tpu.enqueue_dma source(%47 : memref<1x128xf32, #tpu.memory_space<any>>) target(%48 : memref<1x128xf32, #tpu.memory_space<vmem>>) target_semaphore(%50 : memref<!tpu.dma_semaphore, #tpu.memory_space<semaphore_mem>>)
      }
      %c128_i32_30 = arith.constant 128 : i32
    } else {
    }
    %c0_i32_8 = arith.constant 0 : i32
    %c128_i32 = arith.constant 128 : i32
    %17 = arith.addi %c0_i32_8, %c128_i32 : i32
    %c1_i32_9 = arith.constant 1 : i32
    scf.for %arg8 = %c0_i32_8 to %17 step %c1_i32_9  : i32 {
      %c0_i32_17 = arith.constant 0 : i32
      %c0_i32_18 = arith.constant 0 : i32
      %28 = tpu.memref_slice %arg2[%c0_i32_17, %c0_i32_18] : memref<512x128xf32, #tpu.memory_space<any>> -> memref<1x128xf32, #tpu.memory_space<any>>
      %c0_i32_19 = arith.constant 0 : i32
      %c0_i32_20 = arith.constant 0 : i32
      %29 = tpu.memref_slice %arg6[%c0_i32_19, %c0_i32_20] : memref<256x128xf32, #tpu.memory_space<vmem>> -> memref<1x128xf32, #tpu.memory_space<vmem>>
      %30 = tpu.memref_slice %arg7[%9] : memref<2x!tpu.dma_semaphore, #tpu.memory_space<semaphore_mem>> -> memref<1x!tpu.dma_semaphore, #tpu.memory_space<semaphore_mem>>
      %31 = tpu.memref_squeeze %30 : memref<1x!tpu.dma_semaphore, #tpu.memory_space<semaphore_mem>> -> memref<!tpu.dma_semaphore, #tpu.memory_space<semaphore_mem>>
      tpu.wait_dma2 semaphore(%31 : memref<!tpu.dma_semaphore, #tpu.memory_space<semaphore_mem>>) src(%28 : memref<1x128xf32, #tpu.memory_space<any>>) dst(%29 : memref<1x128xf32, #tpu.memory_space<vmem>>)
    }
    %c128_i32_10 = arith.constant 128 : i32
    %18 = arith.muli %9, %c128_i32_10 : i32
    %19 = tpu.assume_multiple %18, 128 : i32
    %20 = arith.index_cast %19 : i32 to index
    %c0 = arith.constant 0 : index
    %21 = vector.load %arg6[%20, %c0] : memref<256x128xf32, #tpu.memory_space<vmem>>, vector<128x128xf32>
    %c0_11 = arith.constant 0 : index
    %c0_12 = arith.constant 0 : index
    %22 = vector.load %arg3[%c0_11, %c0_12] : memref<128x512xf32, #tpu.memory_space<vmem>>, vector<128x512xf32>
    %cst = arith.constant dense<0.000000e+00> : vector<128x512xf32>
    %23 = tpu.matmul %21, %22, %cst {dimension_numbers = #tpu.dot_dimension_numbers<[1], [0], [0], [1], [0, 0, 1, 1], [], []>} : vector<128x128xf32>, vector<128x512xf32>, vector<128x512xf32> -> vector<128x512xf32>
    %c0_13 = arith.constant 0 : index
    %c0_14 = arith.constant 0 : index
    %24 = vector.load %arg4[%c0_13, %c0_14] : memref<1x512xf32, #tpu.memory_space<vmem>>, vector<1x512xf32>
    %25 = vector.broadcast %24 : vector<1x512xf32> to vector<128x512xf32>
    %26 = arith.addf %23, %25 : vector<128x512xf32>
    %c0_15 = arith.constant 0 : index
    %c0_16 = arith.constant 0 : index
    %27 = vector.load %arg5[%c0_15, %c0_16] : memref<128x512xf32, #tpu.memory_space<vmem>>, vector<128x512xf32>
    tpu.vector_store %arg5[%c0_15, %c0_16], %26 {strides = array<i32>} : memref<128x512xf32, #tpu.memory_space<vmem>>, vector<128x512xf32>,
    return
  }
  func.func @transform_1(%arg0: i32, %arg1: memref<128xi32, #tpu.memory_space<smem>>) -> (i32, i32) {
    %c0_i32 = arith.constant 0 : i32
    %c0_i32_0 = arith.constant 0 : i32
    %c0_i32_1 = arith.constant 0 : i32
    return %c0_i32, %c0_i32_0 : i32, i32
  }
  func.func @transform_2(%arg0: i32, %arg1: memref<128xi32, #tpu.memory_space<smem>>) -> (i32, i32) {
    %c0_i32 = arith.constant 0 : i32
    %c0_i32_0 = arith.constant 0 : i32
    %c0_i32_1 = arith.constant 0 : i32
    return %c0_i32, %c0_i32_0 : i32, i32
  }
  func.func @transform_3(%arg0: i32, %arg1: memref<128xi32, #tpu.memory_space<smem>>) -> (i32, i32) {
    %c0_i32 = arith.constant 0 : i32
    %c0_i32_0 = arith.constant 0 : i32
    return %arg0, %c0_i32 : i32, i32
  }
}

</mosaic_0001>

<bundles_post_ra>
// kernel: tpu_custom_call.1
= control target key start
LH: loop header
LB: loop body
LE: loop exit
PB: predicated region body
PF: predicated region fallthrough
CT: control target
= control target key end

     0   :  { %s788_s15 = smov [#allocation5]   ;;  %s961_s0 = inlined_call_operand.hbm [shape: s32[128], index: 0, kind: input, shape index: {}]   ;;  %s962_s1 = inlined_call_operand.hbm [shape: f32[512,128], index: 1, kind: input, shape index: {}]   ;;  %s963_s2 = inlined_call_operand.hbm [shape: f32[128,512], index: 2, kind: input, shape index: {}]   ;;  %s964_s3 = inlined_call_operand.vmem [shape: f32[1,512], index: 3, kind: input, shape index: {}]   ;;  %s965_s4 = inlined_call_operand.hbm [shape: f32[128,512], index: 4, kind: output, shape index: {}]  }
   0x1   :  { %10 = dma.hbm_to_smem %s961_s0, 16, %s788_s15, [#allocation4] }
   0x2   :  { %772 = dma.done.wait [#allocation4], 16 }
   0x3   :  { %773 = vsyncadd [#allocation4], 4294967280 }
   0x4   :  { %12 = sfence }
   0x5   :  { %13 = vsyncpa [#allocation7], 0 }
   0x6   :  { %14 = vsyncpa [#allocation8], 0  ;;  %s789_s18 = smov [#allocation6]  }
   0x7   :  { %s20_s19 = sshll.u32 %s789_s18, 4  ;;  %s21_s19 = int_to_ptr.vmem [resolvable:$true] %s20_s19 }
   0x8   :  { %s710_s20 = scalar_lea.vmem %s21_s19, 8192  ;;  %p715_p1 = scmp.lt.s32.totalorder %s21_s19, %s21_s19 }
   0x9   :  { %p711_p0 = scmp.ne.s32.totalorder %s21_s19, %s710_s20  ;;  %p716_p2 = scmp.lt.s32.totalorder %s710_s20, %s710_s20 }
   0xb   :  { %p717_p3 = por %p716_p2, %p715_p1 }
   0xd   :  { %p718_p4 = pnand %p717_p3, %p711_p0 }
   0xf   :  { %721 = shalt.err (!%p718_p4)
}
  0x10   :  { %s790_s21 = smov 512   ;;  %s791_s22 = smov 32  }
  0x11   :  { %26 = dma.hbm_to_vmem [thread:$0]  %s963_s2, 8192, %s21_s19, [#allocation7], %s790_s21, %s790_s21, %s791_s22  }
  0x12   :  { %774 = dma.done.wait [#allocation7], 8192  }
  0x13   :  { %775 = vsyncadd [#allocation7], 4294959104  ;;  %s829_s24 = smov 0  }
  0x14 LB: > { %s50_s25 = sld [smem:[#allocation5 + %s782_s24]]  ;;  %s53_s26 = scalar_lea.vmem [#allocation2], %s782_s24  ;;  %s782_s24 = sphi %s829_s24, %s49_s24  }
  0x15   : > { %s61_s27 = sshll.u32 %s53_s26, 4  ;;  %s724_s8 = scalar_lea.hbm %s962_s1, 8192  ;;  %s62_s27 = int_to_ptr.vmem [resolvable:$true] %s61_s27 }
  0x1a   : > { %s665_s28 = sshll.u32 %s50_s25, 4 }
  0x1b   : > { %s52_s2 = scalar_lea.hbm %s962_s1, %s665_s28 }
  0x1c   : > { %s722_s5 = scalar_lea.hbm %s52_s2, 16  ;;  %p725_p6 = scmp.lt.s32.totalorder %s52_s2, %s962_s1 }
  0x1d   : > { %p723_p5 = scmp.ne.s32.totalorder %s52_s2, %s722_s5  ;;  %p726_p7 = scmp.lt.s32.totalorder %s724_s8, %s722_s5 }
  0x1f   : > { %p727_p8 = por %p726_p7, %p725_p6 }
  0x21   : > { %p728_p9 = pnand %p727_p8, %p723_p5 }
  0x23   : > { %731 = shalt.err (!%p728_p9)  }
  0x24   : > { %s732_s11 = scalar_lea.vmem %s62_s27, 16  ;;  %s792_s12 = smov [#allocation2]  }
  0x25   : > { %p733_p10 = scmp.ne.s32.totalorder %s62_s27, %s732_s11  ;;  %s734_s13 = sshll.u32 %s792_s12, 4  ;;  %s735_s13 = int_to_ptr.vmem [resolvable:$false] %s734_s13 }
  0x26   : > { %s736_s14 = scalar_lea.vmem %s735_s13, 4096  ;;  %p737_p11 = scmp.lt.s32.totalorder %s62_s27, %s735_s13 }
  0x27   : > { %p738_p12 = scmp.lt.s32.totalorder %s736_s14, %s732_s11 }
  0x29   : > { %p739_p13 = por %p738_p12, %p737_p11 }
  0x2b   : > { %p740_p0 = pnand %p739_p13, %p733_p10 }
  0x2d   : > { %743 = shalt.err (!%p740_p0)  }
  0x2e   : > { %64 = dma.hbm_to_vmem [thread:$0]  %s52_s2, 16, %s62_s27, [#allocation3] }
  0x2f   : > { %s49_s24 = sadd.s32 1, %s782_s24  }
  0x30   : > { %p46_p1 = scmp.ge.s32.totalorder %s49_s24, 128  }
  0x31   :  { %s784_s15 = smov (%p46_p1), 0  }
  0x32   :  { %48 = sbr.rel (!%p46_p1) target bundleno = 20 (0x14), region = 77 }
  0x37 LB: > { %776 = dma.done.wait [#allocation3], 16  ;;  %s786_s15 = sphi %s784_s15, %s113_s15  }
  0x38   : > { %777 = vsyncadd [#allocation3], 4294967280  ;;  %s113_s15 = sadd.s32 1, %s786_s15  }
  0x39   : > { %p110_p2 = scmp.ge.s32.totalorder %s113_s15, 128  }
  0x3a   :  { %v197_v0 = vld [vmem:[#allocation6 + $0x1e8] sm:$0xff] (%p110_p2)  ;;  %v199_v1 = vld [vmem:[#allocation6 + $0x1f8] sm:$0xff] (%p110_p2)  ;;  %v196_v2 = vld [vmem:[#allocation6 + $0x1e0] sm:$0xff] (%p110_p2) }
  0x3b   :  { %112 = sbr.rel (!%p110_p2) target bundleno = 55 (0x37), region = 99  ;;  %222 = vmatprep.subr.mxu0 (%p110_p2), %v197_v0  ;;  %383 = vmatprep.subr.mxu1 (%p110_p2), %v199_v1  ;;  %v198_v3 = vld [vmem:[#allocation6 + $0x1f0] sm:$0xff] (%p110_p2)  ;;  %v193_v4 = vld [vmem:[#allocation6 + $0x1c8] sm:$0xff] (%p110_p2)  ;;  %v195_v5 = vld [vmem:[#allocation6 + $0x1d8] sm:$0xff] (%p110_p2)  ;;  %v793_v1 = vmov (%p110_p2), 0.0  }
  0x3c   :  { %223 = vmatpush1.msra.mxu0 (%p110_p2), %v196_v2  ;;  %384 = vmatpush1.msra.mxu1 (%p110_p2), %v198_v3  ;;  %v192_v6 = vld [vmem:[#allocation6 + $0x1c0] sm:$0xff] (%p110_p2)  ;;  %v194_v7 = vld [vmem:[#allocation6 + $0x1d0] sm:$0xff] (%p110_p2)  ;;  %v189_v8 = vld [vmem:[#allocation6 + $0x1a8] sm:$0xff] (%p110_p2) }
  0x3d   :  { %224 = vmatprep.subr.mxu0 (%p110_p2), %v193_v4  ;;  %385 = vmatprep.subr.mxu1 (%p110_p2), %v195_v5  ;;  %v191_v9 = vld [vmem:[#allocation6 + $0x1b8] sm:$0xff] (%p110_p2)  ;;  %v188_v10 = vld [vmem:[#allocation6 + $0x1a0] sm:$0xff] (%p110_p2)  ;;  %v190_v11 = vld [vmem:[#allocation6 + $0x1b0] sm:$0xff] (%p110_p2) }
  0x3e   :  { %225 = vmatpush1.msra.mxu0 (%p110_p2), %v192_v6  ;;  %386 = vmatpush1.msra.mxu1 (%p110_p2), %v194_v7  ;;  %v185_v12 = vld [vmem:[#allocation6 + $0x188] sm:$0xff] (%p110_p2)  ;;  %v187_v13 = vld [vmem:[#allocation6 + $0x198] sm:$0xff] (%p110_p2)  ;;  %v184_v14 = vld [vmem:[#allocation6 + $0x180] sm:$0xff] (%p110_p2) }
  0x3f   :  { %226 = vmatprep.subr.mxu0 (%p110_p2), %v189_v8  ;;  %387 = vmatprep.subr.mxu1 (%p110_p2), %v191_v9  ;;  %v186_v15 = vld [vmem:[#allocation6 + $0x190] sm:$0xff] (%p110_p2)  ;;  %v181_v16 = vld [vmem:[#allocation6 + $0x168] sm:$0xff] (%p110_p2)  ;;  %v183_v17 = vld [vmem:[#allocation6 + $0x178] sm:$0xff] (%p110_p2) }
  0x40   :  { %227 = vmatpush1.msra.mxu0 %v188_v10  ;;  %388 = vmatpush1.msra.mxu1 %v190_v11  ;;  %v180_v18 = vld [vmem:[#allocation6 + $0x160] sm:$0xff]  ;;  %v182_v19 = vld [vmem:[#allocation6 + $0x170] sm:$0xff]  ;;  %v177_v20 = vld [vmem:[#allocation6 + $0x148] sm:$0xff] }
  0x41   :  { %228 = vmatprep.subr.mxu0 %v185_v12  ;;  %389 = vmatprep.subr.mxu1 %v187_v13  ;;  %v179_v21 = vld [vmem:[#allocation6 + $0x158] sm:$0xff]  ;;  %v176_v22 = vld [vmem:[#allocation6 + $0x140] sm:$0xff]  ;;  %v178_v23 = vld [vmem:[#allocation6 + $0x150] sm:$0xff] }
  0x42   :  { %229 = vmatpush1.msra.mxu0 %v184_v14  ;;  %390 = vmatpush1.msra.mxu1 %v186_v15  ;;  %v173_v24 = vld [vmem:[#allocation6 + $0x128] sm:$0xff]  ;;  %v175_v25 = vld [vmem:[#allocation6 + $0x138] sm:$0xff]  ;;  %v172_v26 = vld [vmem:[#allocation6 + $0x120] sm:$0xff] }
  0x43   :  { %230 = vmatprep.subr.mxu0 %v181_v16  ;;  %391 = vmatprep.subr.mxu1 %v183_v17  ;;  %v174_v27 = vld [vmem:[#allocation6 + $0x130] sm:$0xff]  ;;  %v169_v28 = vld [vmem:[#allocation6 + $0x108] sm:$0xff]  ;;  %v171_v29 = vld [vmem:[#allocation6 + $0x118] sm:$0xff]  ;;  %v202_v17 = vlaneseq }
  0x44   :  { %231 = vmatpush1.msra.mxu0 %v180_v18  ;;  %392 = vmatpush1.msra.mxu1 %v182_v19  ;;  %v168_v30 = vld [vmem:[#allocation6 + $0x100] sm:$0xff]  ;;  %v170_v31 = vld [vmem:[#allocation6 + $0x110] sm:$0xff]  ;;  %v165_v32 = vld [vmem:[#allocation6 + $0xe8] sm:$0xff] }
  0x45   :  { %232 = vmatprep.subr.mxu0 %v177_v20  ;;  %393 = vmatprep.subr.mxu1 %v179_v21  ;;  %v167_v33 = vld [vmem:[#allocation6 + $0xf8] sm:$0xff]  ;;  %v164_v34 = vld [vmem:[#allocation6 + $0xe0] sm:$0xff]  ;;  %v166_v35 = vld [vmem:[#allocation6 + $0xf0] sm:$0xff]  ;;  %v203_v18 = vshrl.u32 %v202_v17, 7 }
  0x46   :  { %233 = vmatpush1.msra.mxu0 %v176_v22  ;;  %394 = vmatpush1.msra.mxu1 %v178_v23  ;;  %v161_v36 = vld [vmem:[#allocation6 + $0xc8] sm:$0xff]  ;;  %v163_v37 = vld [vmem:[#allocation6 + $0xd8] sm:$0xff]  ;;  %v160_v38 = vld [vmem:[#allocation6 + $0xc0] sm:$0xff] }
  0x47   :  { %234 = vmatprep.subr.mxu0 %v173_v24  ;;  %395 = vmatprep.subr.mxu1 %v175_v25  ;;  %v162_v39 = vld [vmem:[#allocation6 + $0xd0] sm:$0xff]  ;;  %v157_v40 = vld [vmem:[#allocation6 + $0xa8] sm:$0xff]  ;;  %v159_v41 = vld [vmem:[#allocation6 + $0xb8] sm:$0xff]  ;;  %v204_v19 = vsub.s32 0, %v203_v18  ;;  %v212_v20 = vsub.s32 2, %v203_v18  ;;  %v208_v22 = vsub.s32 1, %v203_v18 }
  0x48   :  { %235 = vmatpush1.msra.mxu0 %v172_v26  ;;  %396 = vmatpush1.msra.mxu1 %v174_v27  ;;  %v156_v42 = vld [vmem:[#allocation6 + $0xa0] sm:$0xff]  ;;  %v158_v43 = vld [vmem:[#allocation6 + $0xb0] sm:$0xff]  ;;  %v153_v44 = vld [vmem:[#allocation6 + $0x88] sm:$0xff]  ;;  %v216_v23 = vsub.s32 3, %v203_v18 }
  0x49   :  { %236 = vmatprep.subr.mxu0 %v169_v28  ;;  %397 = vmatprep.subr.mxu1 %v171_v29  ;;  %v155_v45 = vld [vmem:[#allocation6 + $0x98] sm:$0xff]  ;;  %v152_v46 = vld [vmem:[#allocation6 + $0x80] sm:$0xff]  ;;  %v154_v47 = vld [vmem:[#allocation6 + $0x90] sm:$0xff] }
  0x4a   :  { %237 = vmatpush1.msra.mxu0 %v168_v30  ;;  %398 = vmatpush1.msra.mxu1 %v170_v31  ;;  %v149_v48 = vld [vmem:[#allocation6 + $0x68] sm:$0xff]  ;;  %v151_v49 = vld [vmem:[#allocation6 + $0x78] sm:$0xff]  ;;  %v148_v50 = vld [vmem:[#allocation6 + $0x60] sm:$0xff] }
  0x4b   :  { %238 = vmatprep.subr.mxu0 %v165_v32  ;;  %399 = vmatprep.subr.mxu1 %v167_v33  ;;  %v150_v51 = vld [vmem:[#allocation6 + $0x70] sm:$0xff]  ;;  %v145_v52 = vld [vmem:[#allocation6 + $0x48] sm:$0xff]  ;;  %v147_v53 = vld [vmem:[#allocation6 + $0x58] sm:$0xff] }
  0x4c   :  { %239 = vmatpush1.msra.mxu0 %v164_v34  ;;  %400 = vmatpush1.msra.mxu1 %v166_v35  ;;  %v144_v54 = vld [vmem:[#allocation6 + $0x40] sm:$0xff]  ;;  %v146_v55 = vld [vmem:[#allocation6 + $0x50] sm:$0xff]  ;;  %v141_v56 = vld [vmem:[#allocation6 + $0x28] sm:$0xff] }
  0x4d   :  { %240 = vmatprep.subr.mxu0 %v161_v36  ;;  %401 = vmatprep.subr.mxu1 %v163_v37  ;;  %v143_v57 = vld [vmem:[#allocation6 + $0x38] sm:$0xff]  ;;  %v140_v58 = vld [vmem:[#allocation6 + $0x20] sm:$0xff]  ;;  %v142_v59 = vld [vmem:[#allocation6 + $0x30] sm:$0xff] }
  0x4e   :  { %241 = vmatpush1.msra.mxu0 %v160_v38  ;;  %402 = vmatpush1.msra.mxu1 %v162_v39  ;;  %v137_v60 = vld [vmem:[#allocation6 + $0x8] sm:$0xff]  ;;  %v139_v61 = vld [vmem:[#allocation6 + $0x18] sm:$0xff]  ;;  %v136_v62 = vld [vmem:[#allocation6] sm:$0xff] }
  0x4f   :  { %242 = vmatprep.subr.mxu0 %v157_v40  ;;  %403 = vmatprep.subr.mxu1 %v159_v41  ;;  %v138_v63 = vld [vmem:[#allocation6 + $0x10] sm:$0xff]  ;;  %v120_v0 = vld [vmem:[#allocation2] sm:$0xff]  ;;  %v121_v2 = vld [vmem:[#allocation2 + $0x8] sm:$0xff] }
  0x50   :  { %243 = vmatpush1.msra.mxu0 %v156_v42  ;;  %404 = vmatpush1.msra.mxu1 %v158_v43  ;;  %v122_v3 = vld [vmem:[#allocation2 + $0x10] sm:$0xff]  ;;  %v123_v4 = vld [vmem:[#allocation2 + $0x18] sm:$0xff]  ;;  %v124_v5 = vld [vmem:[#allocation2 + $0x20] sm:$0xff] }
  0x51   :  { %244 = vmatprep.subr.mxu0 %v153_v44  ;;  %405 = vmatprep.subr.mxu1 %v155_v45  ;;  %v125_v6 = vld [vmem:[#allocation2 + $0x28] sm:$0xff]  ;;  %v126_v7 = vld [vmem:[#allocation2 + $0x30] sm:$0xff]  ;;  %v127_v8 = vld [vmem:[#allocation2 + $0x38] sm:$0xff] }
  0x52   :  { %245 = vmatpush1.msra.mxu0 %v152_v46  ;;  %406 = vmatpush1.msra.mxu1 %v154_v47  ;;  %v128_v9 = vld [vmem:[#allocation2 + $0x40] sm:$0xff]  ;;  %v129_v10 = vld [vmem:[#allocation2 + $0x48] sm:$0xff]  ;;  %v130_v11 = vld [vmem:[#allocation2 + $0x50] sm:$0xff] }
  0x53   :  { %246 = vmatprep.subr.mxu0 %v149_v48  ;;  %407 = vmatprep.subr.mxu1 %v151_v49  ;;  %v131_v12 = vld [vmem:[#allocation2 + $0x58] sm:$0xff]  ;;  %v132_v13 = vld [vmem:[#allocation2 + $0x60] sm:$0xff]  ;;  %v133_v14 = vld [vmem:[#allocation2 + $0x68] sm:$0xff] }
  0x54   :  { %247 = vmatpush1.msra.mxu0 %v148_v50  ;;  %408 = vmatpush1.msra.mxu1 %v150_v51  ;;  %v134_v15 = vld [vmem:[#allocation2 + $0x70] sm:$0xff]  ;;  %v135_v16 = vld [vmem:[#allocation2 + $0x78] sm:$0xff]  ;;  %v200_v21 = vld [vmem:[%s964_s3] sm:$0xf]  ;;  %s794_s3 = smov [#allocation9]  }
  0x55   :  { %248 = vmatprep.subr.mxu0 %v145_v52  ;;  %409 = vmatprep.subr.mxu1 %v147_v53  ;;  %v883_v24 = vrot.slane %v200_v21, %v204_v19  ;;  %v885_v25 = vrot.slane %v200_v21, %v212_v20  ;;  %v887_v26 = vrot.slane %v200_v21, %v208_v22  ;;  %s613_s17 = sshll.u32 %s794_s3, 4  ;;  %s614_s17 = int_to_ptr.vmem [resolvable:$true] %s613_s17 }
  0x56   :  { %249 = vmatpush1.msra.mxu0 %v144_v54  ;;  %410 = vmatpush1.msra.mxu1 %v146_v55  ;;  %v889_v27 = vrot.slane %v200_v21, %v216_v23  ;;  %s744_s18 = scalar_lea.vmem %s614_s17, 8192  ;;  %p749_p4 = scmp.lt.s32.totalorder %s614_s17, %s614_s17 }
  0x57   :  { %250 = vmatprep.subr.mxu0 %v141_v56  ;;  %411 = vmatprep.subr.mxu1 %v143_v57  ;;  %p745_p3 = scmp.ne.s32.totalorder %s614_s17, %s744_s18  ;;  %p750_p5 = scmp.lt.s32.totalorder %s744_s18, %s744_s18 }
  0x58   :  { %251 = vmatpush1.msra.mxu0 %v140_v58  ;;  %412 = vmatpush1.msra.mxu1 %v142_v59 }
  0x59   :  { %252 = vmatprep.subr.mxu0 %v137_v60  ;;  %413 = vmatprep.subr.mxu1 %v139_v61  ;;  %p751_p6 = por %p750_p5, %p749_p4 }
  0x5a   :  { %253 = vmatpush1.msra.mxu0 %v136_v62  ;;  %286 = vmatprep.mubr.f32.mxu0 %v793_v1 }
  0x5b   :  { %414 = vmatpush1.msra.mxu1 %v138_v63  ;;  %447 = vmatprep.mubr.f32.mxu1 %v793_v1  ;;  %p752_p7 = pnand %p751_p6, %p745_p3 }
  0x5c   :  { %287 = vmatmul.mubr.f32.vlgmr.msra.gmra.mxu0 %v120_v0  ;;  %448 = vmatmul.mubr.f32.vlgmr.msra.gmra.mxu1 %v120_v0 }
  0x5d   :  { %292 = vmatprep.mubr.f32.mxu0 %v793_v1  ;;  %453 = vmatprep.mubr.f32.mxu1 %v793_v1 }
  0x60   :  { %293 = vmatmul.mubr.f32.gmra.mxu0 %v121_v2  ;;  %454 = vmatmul.mubr.f32.gmra.mxu1 %v121_v2 }
  0x61   :  { %298 = vmatprep.mubr.f32.mxu0 %v793_v1  ;;  %459 = vmatprep.mubr.f32.mxu1 %v793_v1 }
  0x64   :  { %299 = vmatmul.mubr.f32.gmra.mxu0 %v122_v3  ;;  %460 = vmatmul.mubr.f32.gmra.mxu1 %v122_v3 }
  0x65   :  { %304 = vmatprep.mubr.f32.mxu0 %v793_v1  ;;  %465 = vmatprep.mubr.f32.mxu1 %v793_v1 }
  0x68   :  { %305 = vmatmul.mubr.f32.gmra.mxu0 %v123_v4  ;;  %466 = vmatmul.mubr.f32.gmra.mxu1 %v123_v4 }
  0x69   :  { %310 = vmatprep.mubr.f32.mxu0 %v793_v1  ;;  %471 = vmatprep.mubr.f32.mxu1 %v793_v1 }
  0x6c   :  { %311 = vmatmul.mubr.f32.gmra.mxu0 %v124_v5  ;;  %472 = vmatmul.mubr.f32.gmra.mxu1 %v124_v5 }
  0x6d   :  { %316 = vmatprep.mubr.f32.mxu0 %v793_v1  ;;  %477 = vmatprep.mubr.f32.mxu1 %v793_v1 }
  0x70   :  { %317 = vmatmul.mubr.f32.gmra.mxu0 %v125_v6  ;;  %478 = vmatmul.mubr.f32.gmra.mxu1 %v125_v6 }
  0x71   :  { %322 = vmatprep.mubr.f32.mxu0 %v793_v1  ;;  %483 = vmatprep.mubr.f32.mxu1 %v793_v1 }
  0x74   :  { %323 = vmatmul.mubr.f32.gmra.mxu0 %v126_v7  ;;  %484 = vmatmul.mubr.f32.gmra.mxu1 %v126_v7 }
  0x75   :  { %328 = vmatprep.mubr.f32.mxu0 %v793_v1  ;;  %489 = vmatprep.mubr.f32.mxu1 %v793_v1 }
  0x78   :  { %329 = vmatmul.mubr.f32.gmra.mxu0 %v127_v8  ;;  %490 = vmatmul.mubr.f32.gmra.mxu1 %v127_v8 }
  0x79   :  { %334 = vmatprep.mubr.f32.mxu0 %v793_v1  ;;  %495 = vmatprep.mubr.f32.mxu1 %v793_v1 }
  0x7c   :  { %335 = vmatmul.mubr.f32.gmra.mxu0 %v128_v9  ;;  %496 = vmatmul.mubr.f32.gmra.mxu1 %v128_v9 }
  0x7d   :  { %340 = vmatprep.mubr.f32.mxu0 %v793_v1  ;;  %501 = vmatprep.mubr.f32.mxu1 %v793_v1 }
  0x80   :  { %341 = vmatmul.mubr.f32.gmra.mxu0 %v129_v10  ;;  %502 = vmatmul.mubr.f32.gmra.mxu1 %v129_v10 }
  0x81   :  { %346 = vmatprep.mubr.f32.mxu0 %v793_v1  ;;  %507 = vmatprep.mubr.f32.mxu1 %v793_v1 }
  0x84   :  { %347 = vmatmul.mubr.f32.gmra.mxu0 %v130_v11  ;;  %508 = vmatmul.mubr.f32.gmra.mxu1 %v130_v11 }
  0x85   :  { %352 = vmatprep.mubr.f32.mxu0 %v793_v1  ;;  %513 = vmatprep.mubr.f32.mxu1 %v793_v1 }
  0x88   :  { %353 = vmatmul.mubr.f32.gmra.mxu0 %v131_v12  ;;  %514 = vmatmul.mubr.f32.gmra.mxu1 %v131_v12 }
  0x89   :  { %358 = vmatprep.mubr.f32.mxu0 %v793_v1  ;;  %519 = vmatprep.mubr.f32.mxu1 %v793_v1 }
  0x8c   :  { %359 = vmatmul.mubr.f32.gmra.mxu0 %v132_v13  ;;  %520 = vmatmul.mubr.f32.gmra.mxu1 %v132_v13 }
  0x8d   :  { %364 = vmatprep.mubr.f32.mxu0 %v793_v1  ;;  %525 = vmatprep.mubr.f32.mxu1 %v793_v1 }
  0x90   :  { %365 = vmatmul.mubr.f32.gmra.mxu0 %v133_v14  ;;  %526 = vmatmul.mubr.f32.gmra.mxu1 %v133_v14 }
  0x91   :  { %370 = vmatprep.mubr.f32.mxu0 %v793_v1  ;;  %531 = vmatprep.mubr.f32.mxu1 %v793_v1 }
  0x94   :  { %371 = vmatmul.mubr.f32.gmra.mxu0 %v134_v15  ;;  %532 = vmatmul.mubr.f32.gmra.mxu1 %v134_v15 }
  0x95   :  { %376 = vmatprep.mubr.f32.mxu0 %v793_v1  ;;  %537 = vmatprep.mubr.f32.mxu1 %v793_v1 }
  0x98   :  { %377 = vmatmul.mubr.f32.gmra.mxu0 %v135_v16  ;;  %538 = vmatmul.mubr.f32.gmra.mxu1 %v135_v16 }
 0x11c   :  { %v288_v28 = vpop.f32.mrf.mxu0  ;;  %v449_v29 = vpop.f32.mrf.mxu1 }
 0x11d   :  { %v289_v30 = vadd.f32 %v288_v28, %v883_v24  ;;  %v450_v31 = vadd.f32 %v449_v29, %v885_v25 }
 0x11e   :  { %v290_v32 = vpop.f32.mrf.mxu0  ;;  %v451_v33 = vpop.f32.mrf.mxu1 }
 0x11f   :  { %544 = vst [vmem:[#allocation9] sm:$0xff] %v289_v30  ;;  %546 = vst [vmem:[#allocation9 + $0x10] sm:$0xff] %v450_v31  ;;  %v291_v34 = vadd.f32 %v290_v32, %v887_v26  ;;  %v452_v35 = vadd.f32 %v451_v33, %v889_v27 }
 0x120   :  { %v294_v36 = vpop.f32.mrf.mxu0  ;;  %v455_v37 = vpop.f32.mrf.mxu1 }
 0x121   :  { %545 = vst [vmem:[#allocation9 + $0x8] sm:$0xff] %v291_v34  ;;  %547 = vst [vmem:[#allocation9 + $0x18] sm:$0xff] %v452_v35  ;;  %v295_v38 = vadd.f32 %v294_v36, %v883_v24  ;;  %v456_v39 = vadd.f32 %v455_v37, %v885_v25 }
 0x122   :  { %v296_v40 = vpop.f32.mrf.mxu0  ;;  %v457_v41 = vpop.f32.mrf.mxu1 }
 0x123   :  { %548 = vst [vmem:[#allocation9 + $0x20] sm:$0xff] %v295_v38  ;;  %550 = vst [vmem:[#allocation9 + $0x30] sm:$0xff] %v456_v39  ;;  %v297_v42 = vadd.f32 %v296_v40, %v887_v26  ;;  %v458_v43 = vadd.f32 %v457_v41, %v889_v27 }
 0x124   :  { %v300_v44 = vpop.f32.mrf.mxu0  ;;  %v461_v45 = vpop.f32.mrf.mxu1 }
 0x125   :  { %549 = vst [vmem:[#allocation9 + $0x28] sm:$0xff] %v297_v42  ;;  %551 = vst [vmem:[#allocation9 + $0x38] sm:$0xff] %v458_v43  ;;  %v301_v46 = vadd.f32 %v300_v44, %v883_v24  ;;  %v462_v47 = vadd.f32 %v461_v45, %v885_v25 }
 0x126   :  { %v302_v48 = vpop.f32.mrf.mxu0  ;;  %v463_v49 = vpop.f32.mrf.mxu1 }
 0x127   :  { %552 = vst [vmem:[#allocation9 + $0x40] sm:$0xff] %v301_v46  ;;  %554 = vst [vmem:[#allocation9 + $0x50] sm:$0xff] %v462_v47  ;;  %v303_v50 = vadd.f32 %v302_v48, %v887_v26  ;;  %v464_v51 = vadd.f32 %v463_v49, %v889_v27 }
 0x128   :  { %v306_v52 = vpop.f32.mrf.mxu0  ;;  %v467_v53 = vpop.f32.mrf.mxu1 }
 0x129   :  { %553 = vst [vmem:[#allocation9 + $0x48] sm:$0xff] %v303_v50  ;;  %555 = vst [vmem:[#allocation9 + $0x58] sm:$0xff] %v464_v51  ;;  %v307_v54 = vadd.f32 %v306_v52, %v883_v24  ;;  %v468_v55 = vadd.f32 %v467_v53, %v885_v25 }
 0x12a   :  { %v308_v56 = vpop.f32.mrf.mxu0  ;;  %v469_v57 = vpop.f32.mrf.mxu1 }
 0x12b   :  { %556 = vst [vmem:[#allocation9 + $0x60] sm:$0xff] %v307_v54  ;;  %558 = vst [vmem:[#allocation9 + $0x70] sm:$0xff] %v468_v55  ;;  %v309_v58 = vadd.f32 %v308_v56, %v887_v26  ;;  %v470_v59 = vadd.f32 %v469_v57, %v889_v27 }
 0x12c   :  { %v312_v60 = vpop.f32.mrf.mxu0  ;;  %v473_v61 = vpop.f32.mrf.mxu1 }
 0x12d   :  { %557 = vst [vmem:[#allocation9 + $0x68] sm:$0xff] %v309_v58  ;;  %559 = vst [vmem:[#allocation9 + $0x78] sm:$0xff] %v470_v59  ;;  %v313_v62 = vadd.f32 %v312_v60, %v883_v24  ;;  %v474_v63 = vadd.f32 %v473_v61, %v885_v25 }
 0x12e   :  { %v314_v0 = vpop.f32.mrf.mxu0  ;;  %v475_v1 = vpop.f32.mrf.mxu1 }
 0x12f   :  { %560 = vst [vmem:[#allocation9 + $0x80] sm:$0xff] %v313_v62  ;;  %562 = vst [vmem:[#allocation9 + $0x90] sm:$0xff] %v474_v63  ;;  %v315_v2 = vadd.f32 %v314_v0, %v887_v26  ;;  %v476_v3 = vadd.f32 %v475_v1, %v889_v27 }
 0x130   :  { %v318_v4 = vpop.f32.mrf.mxu0  ;;  %v479_v5 = vpop.f32.mrf.mxu1 }
 0x131   :  { %561 = vst [vmem:[#allocation9 + $0x88] sm:$0xff] %v315_v2  ;;  %563 = vst [vmem:[#allocation9 + $0x98] sm:$0xff] %v476_v3  ;;  %v319_v6 = vadd.f32 %v318_v4, %v883_v24  ;;  %v480_v7 = vadd.f32 %v479_v5, %v885_v25 }
 0x132   :  { %v320_v8 = vpop.f32.mrf.mxu0  ;;  %v481_v9 = vpop.f32.mrf.mxu1 }
 0x133   :  { %564 = vst [vmem:[#allocation9 + $0xa0] sm:$0xff] %v319_v6  ;;  %566 = vst [vmem:[#allocation9 + $0xb0] sm:$0xff] %v480_v7  ;;  %v321_v10 = vadd.f32 %v320_v8, %v887_v26  ;;  %v482_v11 = vadd.f32 %v481_v9, %v889_v27 }
 0x134   :  { %v324_v12 = vpop.f32.mrf.mxu0  ;;  %v485_v13 = vpop.f32.mrf.mxu1 }
 0x135   :  { %565 = vst [vmem:[#allocation9 + $0xa8] sm:$0xff] %v321_v10  ;;  %567 = vst [vmem:[#allocation9 + $0xb8] sm:$0xff] %v482_v11  ;;  %v325_v14 = vadd.f32 %v324_v12, %v883_v24  ;;  %v486_v15 = vadd.f32 %v485_v13, %v885_v25 }
 0x136   :  { %v326_v16 = vpop.f32.mrf.mxu0  ;;  %v487_v17 = vpop.f32.mrf.mxu1 }
 0x137   :  { %568 = vst [vmem:[#allocation9 + $0xc0] sm:$0xff] %v325_v14  ;;  %570 = vst [vmem:[#allocation9 + $0xd0] sm:$0xff] %v486_v15  ;;  %v327_v18 = vadd.f32 %v326_v16, %v887_v26  ;;  %v488_v19 = vadd.f32 %v487_v17, %v889_v27 }
 0x138   :  { %v330_v20 = vpop.f32.mrf.mxu0  ;;  %v491_v21 = vpop.f32.mrf.mxu1 }
 0x139   :  { %569 = vst [vmem:[#allocation9 + $0xc8] sm:$0xff] %v327_v18  ;;  %571 = vst [vmem:[#allocation9 + $0xd8] sm:$0xff] %v488_v19  ;;  %v331_v22 = vadd.f32 %v330_v20, %v883_v24  ;;  %v492_v23 = vadd.f32 %v491_v21, %v885_v25 }
 0x13a   :  { %v332_v28 = vpop.f32.mrf.mxu0  ;;  %v493_v29 = vpop.f32.mrf.mxu1 }
 0x13b   :  { %572 = vst [vmem:[#allocation9 + $0xe0] sm:$0xff] %v331_v22  ;;  %574 = vst [vmem:[#allocation9 + $0xf0] sm:$0xff] %v492_v23  ;;  %v333_v30 = vadd.f32 %v332_v28, %v887_v26  ;;  %v494_v31 = vadd.f32 %v493_v29, %v889_v27 }
 0x13c   :  { %v336_v32 = vpop.f32.mrf.mxu0  ;;  %v497_v33 = vpop.f32.mrf.mxu1 }
 0x13d   :  { %573 = vst [vmem:[#allocation9 + $0xe8] sm:$0xff] %v333_v30  ;;  %575 = vst [vmem:[#allocation9 + $0xf8] sm:$0xff] %v494_v31  ;;  %v337_v34 = vadd.f32 %v336_v32, %v883_v24  ;;  %v498_v35 = vadd.f32 %v497_v33, %v885_v25 }
 0x13e   :  { %v338_v36 = vpop.f32.mrf.mxu0  ;;  %v499_v37 = vpop.f32.mrf.mxu1 }
 0x13f   :  { %576 = vst [vmem:[#allocation9 + $0x100] sm:$0xff] %v337_v34  ;;  %578 = vst [vmem:[#allocation9 + $0x110] sm:$0xff] %v498_v35  ;;  %v339_v38 = vadd.f32 %v338_v36, %v887_v26  ;;  %v500_v39 = vadd.f32 %v499_v37, %v889_v27 }
 0x140   :  { %v342_v40 = vpop.f32.mrf.mxu0  ;;  %v503_v41 = vpop.f32.mrf.mxu1 }
 0x141   :  { %577 = vst [vmem:[#allocation9 + $0x108] sm:$0xff] %v339_v38  ;;  %579 = vst [vmem:[#allocation9 + $0x118] sm:$0xff] %v500_v39  ;;  %v343_v42 = vadd.f32 %v342_v40, %v883_v24  ;;  %v504_v43 = vadd.f32 %v503_v41, %v885_v25 }
 0x142   :  { %v344_v44 = vpop.f32.mrf.mxu0  ;;  %v505_v45 = vpop.f32.mrf.mxu1 }
 0x143   :  { %580 = vst [vmem:[#allocation9 + $0x120] sm:$0xff] %v343_v42  ;;  %582 = vst [vmem:[#allocation9 + $0x130] sm:$0xff] %v504_v43  ;;  %v345_v46 = vadd.f32 %v344_v44, %v887_v26  ;;  %v506_v47 = vadd.f32 %v505_v45, %v889_v27 }
 0x144   :  { %v348_v48 = vpop.f32.mrf.mxu0  ;;  %v509_v49 = vpop.f32.mrf.mxu1 }
 0x145   :  { %581 = vst [vmem:[#allocation9 + $0x128] sm:$0xff] %v345_v46  ;;  %583 = vst [vmem:[#allocation9 + $0x138] sm:$0xff] %v506_v47  ;;  %v349_v50 = vadd.f32 %v348_v48, %v883_v24  ;;  %v510_v51 = vadd.f32 %v509_v49, %v885_v25 }
 0x146   :  { %v350_v52 = vpop.f32.mrf.mxu0  ;;  %v511_v53 = vpop.f32.mrf.mxu1 }
 0x147   :  { %584 = vst [vmem:[#allocation9 + $0x140] sm:$0xff] %v349_v50  ;;  %586 = vst [vmem:[#allocation9 + $0x150] sm:$0xff] %v510_v51  ;;  %v351_v54 = vadd.f32 %v350_v52, %v887_v26  ;;  %v512_v55 = vadd.f32 %v511_v53, %v889_v27 }
 0x148   :  { %v354_v56 = vpop.f32.mrf.mxu0  ;;  %v515_v57 = vpop.f32.mrf.mxu1 }
 0x149   :  { %585 = vst [vmem:[#allocation9 + $0x148] sm:$0xff] %v351_v54  ;;  %587 = vst [vmem:[#allocation9 + $0x158] sm:$0xff] %v512_v55  ;;  %v355_v58 = vadd.f32 %v354_v56, %v883_v24  ;;  %v516_v59 = vadd.f32 %v515_v57, %v885_v25 }
 0x14a   :  { %v356_v60 = vpop.f32.mrf.mxu0  ;;  %v517_v61 = vpop.f32.mrf.mxu1 }
 0x14b   :  { %588 = vst [vmem:[#allocation9 + $0x160] sm:$0xff] %v355_v58  ;;  %590 = vst [vmem:[#allocation9 + $0x170] sm:$0xff] %v516_v59  ;;  %v357_v62 = vadd.f32 %v356_v60, %v887_v26  ;;  %v518_v63 = vadd.f32 %v517_v61, %v889_v27 }
 0x14c   :  { %v360_v0 = vpop.f32.mrf.mxu0  ;;  %v521_v1 = vpop.f32.mrf.mxu1 }
 0x14d   :  { %589 = vst [vmem:[#allocation9 + $0x168] sm:$0xff] %v357_v62  ;;  %591 = vst [vmem:[#allocation9 + $0x178] sm:$0xff] %v518_v63  ;;  %v361_v2 = vadd.f32 %v360_v0, %v883_v24  ;;  %v522_v3 = vadd.f32 %v521_v1, %v885_v25 }
 0x14e   :  { %v362_v4 = vpop.f32.mrf.mxu0  ;;  %v523_v5 = vpop.f32.mrf.mxu1 }
 0x14f   :  { %592 = vst [vmem:[#allocation9 + $0x180] sm:$0xff] %v361_v2  ;;  %594 = vst [vmem:[#allocation9 + $0x190] sm:$0xff] %v522_v3  ;;  %v363_v6 = vadd.f32 %v362_v4, %v887_v26  ;;  %v524_v7 = vadd.f32 %v523_v5, %v889_v27 }
 0x150   :  { %v366_v8 = vpop.f32.mrf.mxu0  ;;  %v527_v9 = vpop.f32.mrf.mxu1 }
 0x151   :  { %593 = vst [vmem:[#allocation9 + $0x188] sm:$0xff] %v363_v6  ;;  %595 = vst [vmem:[#allocation9 + $0x198] sm:$0xff] %v524_v7  ;;  %v367_v10 = vadd.f32 %v366_v8, %v883_v24  ;;  %v528_v11 = vadd.f32 %v527_v9, %v885_v25 }
 0x152   :  { %v368_v12 = vpop.f32.mrf.mxu0  ;;  %v529_v13 = vpop.f32.mrf.mxu1 }
 0x153   :  { %596 = vst [vmem:[#allocation9 + $0x1a0] sm:$0xff] %v367_v10  ;;  %598 = vst [vmem:[#allocation9 + $0x1b0] sm:$0xff] %v528_v11  ;;  %v369_v14 = vadd.f32 %v368_v12, %v887_v26  ;;  %v530_v15 = vadd.f32 %v529_v13, %v889_v27 }
 0x154   :  { %v372_v16 = vpop.f32.mrf.mxu0  ;;  %v533_v17 = vpop.f32.mrf.mxu1 }
 0x155   :  { %597 = vst [vmem:[#allocation9 + $0x1a8] sm:$0xff] %v369_v14  ;;  %599 = vst [vmem:[#allocation9 + $0x1b8] sm:$0xff] %v530_v15  ;;  %v373_v18 = vadd.f32 %v372_v16, %v883_v24  ;;  %v534_v19 = vadd.f32 %v533_v17, %v885_v25 }
 0x156   :  { %v374_v20 = vpop.f32.mrf.mxu0  ;;  %v535_v21 = vpop.f32.mrf.mxu1 }
 0x157   :  { %600 = vst [vmem:[#allocation9 + $0x1c0] sm:$0xff] %v373_v18  ;;  %602 = vst [vmem:[#allocation9 + $0x1d0] sm:$0xff] %v534_v19  ;;  %v375_v22 = vadd.f32 %v374_v20, %v887_v26  ;;  %v536_v23 = vadd.f32 %v535_v21, %v889_v27 }
 0x158   :  { %v378_v28 = vpop.f32.mrf.mxu0  ;;  %v539_v29 = vpop.f32.mrf.mxu1 }
 0x159   :  { %601 = vst [vmem:[#allocation9 + $0x1c8] sm:$0xff] %v375_v22  ;;  %603 = vst [vmem:[#allocation9 + $0x1d8] sm:$0xff] %v536_v23  ;;  %v379_v30 = vadd.f32 %v378_v28, %v883_v24  ;;  %v540_v31 = vadd.f32 %v539_v29, %v885_v25 }
 0x15a   :  { %v380_v32 = vpop.f32.mrf.mxu0  ;;  %v541_v33 = vpop.f32.mrf.mxu1 }
 0x15b   :  { %604 = vst [vmem:[#allocation9 + $0x1e0] sm:$0xff] %v379_v30  ;;  %606 = vst [vmem:[#allocation9 + $0x1f0] sm:$0xff] %v540_v31  ;;  %v381_v34 = vadd.f32 %v380_v32, %v887_v26  ;;  %v542_v35 = vadd.f32 %v541_v33, %v889_v27 }
 0x15d   :  { %605 = vst [vmem:[#allocation9 + $0x1e8] sm:$0xff] %v381_v34  ;;  %607 = vst [vmem:[#allocation9 + $0x1f8] sm:$0xff] %v542_v35 }
 0x15e   :  { %755 = shalt.err (!%p752_p7)
}
 0x15f   :  { %619 = dma.vmem_to_hbm [thread:$0]  %s614_s17, 8192, %s965_s4, [#allocation8], %s790_s21, %s790_s21, %s791_s22  }
 0x160   :  { %778 = dma.done.wait [#allocation8], 8192  }
 0x161   :  { %779 = vsyncadd [#allocation8], 4294959104 }
 0x162   :  { %623 = vsyncpa [#allocation7], 1 }
 0x163   :  { %624 = vsyncpa [#allocation8], 1 }
 0x164   :  { %625 = vsyncmov [#allocation3] }
 0x167   :  { %s626_s0 = vpop.sfrf %625 }
 0x168   :  { %p668_p8 = scmp.ne.s32.totalorder %s626_s0, 0 }
 0x16a   :  { %630 = shalt.err (%p668_p8)  }
 0x16b   :  { %632 = vsyncmov [#allocation3 + $0x1] }
 0x16e   :  { %s633_s23 = vpop.sfrf %632 }
 0x16f   :  { %p669_p9 = scmp.ne.s32.totalorder %s633_s23, 0 }
 0x171   :  { %637 = shalt.err (%p669_p9)  }

</bundles_post_ra>
